<compile_context>
chip_gen: v7x
topology: tpu7x:2x2x1
jax: 0.10.0
libtpu: 0.0.40
codegen_flags: <defaults>
</compile_context>

<pallas_src>
import functools

import jax
import jax.numpy as jnp
from jax.experimental import pallas as pl
from jax.experimental.pallas import tpu as pltpu


def _round_up(x, m):
    return ((x + m - 1) // m) * m


# ---------------------------------------------------------------------------
# Pallas kernel: K-tiled (conv-as-matmul) -> +bias -> SiLU -> 1x1 zero-conv
# ---------------------------------------------------------------------------
def _encoder_layer_kernel(p_ref, w1_ref, b1_ref, wz_ref, bz_ref,
                          feat_ref, zout_ref, acc_ref):
    # p_ref   : [tm, tk]    bf16 im2col patch tile (streamed over rows and K)
    # w1_ref  : [tk, Cop]   bf16 3x3 conv weight K-tile
    # b1_ref  : [1, Cop]    f32  conv bias                (resident, 1 buffer)
    # wz_ref  : [Cop, Cop]  bf16 1x1 zero-conv weight     (resident, 1 buffer)
    # bz_ref  : [1, Cop]    f32  zero-conv bias           (resident, 1 buffer)
    # feat_ref: [tm, Cop]   bf16 SiLU activation (feeds the next stage)
    # zout_ref: [tm, Cop]   bf16 zero-conv output
    # acc_ref : [tm, Cop]   f32  VMEM accumulator scratch
    k = pl.program_id(1)

    @pl.when(k == 0)
    def _():
        acc_ref[...] = jnp.zeros_like(acc_ref)

    acc_ref[...] += jnp.dot(p_ref[...], w1_ref[...],
                            preferred_element_type=jnp.float32)

    @pl.when(k == pl.num_programs(1) - 1)
    def _():
        y = acc_ref[...] + b1_ref[...]
        # SiLU: y * sigmoid(y). exp + approx reciprocal both run on the EUP
        # slot, keeping the VALU free for the bias add / casts.
        f = y * pl.reciprocal(1.0 + jnp.exp(-y), approx=True)
        fb = f.astype(jnp.bfloat16)
        feat_ref[...] = fb
        z = jnp.dot(fb, wz_ref[...],
                    preferred_element_type=jnp.float32) + bz_ref[...]
        zout_ref[...] = z.astype(zout_ref.dtype)


# ---------------------------------------------------------------------------
# Generation-aware VMEM policy + tile planning
# ---------------------------------------------------------------------------
def _vmem_limit_bytes():
    cap = 64 << 20                      # conservative default (v7x-sized)
    try:
        cap = int(pltpu.get_tpu_info().vmem_capacity_bytes)
    except Exception:
        pass
    # Never request all of physical VMEM: leave headroom for compiler
    # scratch/semaphores (v7x: 64->56 MiB, v5e/v6e: 128->112 MiB).
    return max(32 << 20, min(cap - (8 << 20), 112 << 20))


def _plan_tiles(M, k_pad, cop, vmem_limit, tm_max=512):
    """Pick (row tile, K tile). tk always divides k_pad (multiple of 128)."""
    budget = max(vmem_limit - (6 << 20), 8 << 20)
    q = k_pad // 128
    tk_best, tm_best = 128, 8           # last-resort fallback
    for d in sorted((d for d in range(1, q + 1) if q % d == 0), reverse=True):
        tk = 128 * d
        nk = k_pad // tk
        w1_bufs = 1 if nk == 1 else 2   # resident (Buffered(1)) vs streamed
        resident = (w1_bufs * tk * cop * 2   # conv weight (bf16)
                    + cop * cop * 2          # zero-conv weight (bf16, 1 buf)
                    + 4 * cop * 4)           # biases (f32, 1 buf each)
        avail = budget - resident
        if avail <= 0:
            continue
        per_row = (2 * tk * 2      # patch tile, double-buffered bf16
                   + 4 * cop * 2   # feat + zout blocks (bf16, up to 2 bufs)
                   + cop * 4       # f32 accumulator scratch
                   + 2 * cop * 4)  # in-kernel f32 temporaries (y, f)
        tm = min(tm_max, avail // per_row // 8 * 8)
        if tm >= 8:
            tk_best, tm_best = tk, tm
            break
    tm, tk = tm_best, tk_best
    tm = min(tm, _round_up(M, 8))
    if M % tm != 0:
        # Prefer a row tile that divides M exactly (avoids a ragged tail tile).
        for cand in range(tm - 8, 7, -8):
            if M % cand == 0 and cand * 2 >= tm:
                tm = cand
                break
    return tm, tk


def _encoder_layer_pallas(patches, w1_mat, b1, wz_mat, bz):
    """patches: [M, K_pad] bf16 -> (feat [M, Cop] bf16, zout [M, Cop] bf16)."""
    M, k_pad = patches.shape
    cop = w1_mat.shape[1]
    vmem_limit = _vmem_limit_bytes()
    tm, tk = _plan_tiles(M, k_pad, cop, vmem_limit)
    nk = k_pad // tk
    grid = (pl.cdiv(M, tm), nk)

    resident = pl.Buffered(1)           # single buffer for constant-index blocks
    if nk == 1:
        w1_spec = pl.BlockSpec((tk, cop), lambda i, k: (k, 0),
                               pipeline_mode=resident)
    else:
        w1_spec = pl.BlockSpec((tk, cop), lambda i, k: (k, 0))

    in_specs = [
        pl.BlockSpec((tm, tk), lambda i, k: (i, k)),           # patches (streamed)
        w1_spec,                                               # conv weight
        pl.BlockSpec((1, cop), lambda i, k: (0, 0),
                     pipeline_mode=resident),                  # conv bias
        pl.BlockSpec((cop, cop), lambda i, k: (0, 0),
                     pipeline_mode=resident),                  # zero-conv weight
        pl.BlockSpec((1, cop), lambda i, k: (0, 0),
                     pipeline_mode=resident),                  # zero-conv bias
    ]
    out_specs = [
        pl.BlockSpec((tm, cop), lambda i, k: (i, 0)),          # SiLU feature
        pl.BlockSpec((tm, cop), lambda i, k: (i, 0)),          # zero-conv out
    ]

    feat, zout = pl.pallas_call(
        _encoder_layer_kernel,
        out_shape=(jax.ShapeDtypeStruct((M, cop), jnp.bfloat16),
                   jax.ShapeDtypeStruct((M, cop), jnp.bfloat16)),
        grid_spec=pltpu.PrefetchScalarGridSpec(
            num_scalar_prefetch=0,
            grid=grid,
            in_specs=in_specs,
            out_specs=out_specs,
            scratch_shapes=[pltpu.VMEM((tm, cop), jnp.float32)],
        ),
        compiler_params=pltpu.CompilerParams(
            dimension_semantics=("parallel", "arbitrary"),
            vmem_limit_bytes=int(vmem_limit)),
    )(patches, w1_mat, b1, wz_mat, bz)
    return feat, zout


# ---------------------------------------------------------------------------
# Glue: im2col for 3x3 conv (pad=1, stride in {1,2}); K pad fused in (bf16)
# ---------------------------------------------------------------------------
def _im2col_3x3(x_nhwc, stride, k_pad):
    N, H, W, C = x_nhwc.shape
    xp = jnp.pad(x_nhwc, ((0, 0), (1, 1), (1, 1), (0, 0)))
    Ho = (H + 2 - 3) // stride + 1
    Wo = (W + 2 - 3) // stride + 1
    cols = []
    for dh in range(3):
        for dw in range(3):
            cols.append(xp[:, dh:dh + stride * (Ho - 1) + 1:stride,
                           dw:dw + stride * (Wo - 1) + 1:stride, :])
    if k_pad > 9 * C:   # fuse the K zero-pad into the concat (one materialization)
        cols.append(jnp.zeros((N, Ho, Wo, k_pad - 9 * C), x_nhwc.dtype))
    patches = jnp.concatenate(cols, axis=-1)        # K order: (kh, kw, c_in)
    return patches.reshape(N * Ho * Wo, k_pad), Ho, Wo


# ---------------------------------------------------------------------------
# Module: FlowControlNetFirstFrameEncoder
# ---------------------------------------------------------------------------
def init_params(key, c_in, channels):
    """Deterministic synthetic params, PyTorch layouts:
       conv w [Co,Ci,3,3], b [Co]; zeroconv w [Co,Co,1,1]=0, b [Co]=0."""
    params = []
    for co in channels:
        key, k1, k2 = jax.random.split(key, 3)
        w = jax.random.normal(k1, (co, c_in, 3, 3), jnp.float32) * 0.05
        b = jax.random.normal(k2, (co,), jnp.float32) * 0.05
        wz = jnp.zeros((co, co, 1, 1), jnp.float32)   # zero_module
        bz = jnp.zeros((co,), jnp.float32)
        params.append((w, b, wz, bz))
        c_in = co
    return params


def flow_controlnet_first_frame_encoder(first_frame_nchw, params, downsamples):
    """first_frame: [B, C, H, W] float32 -> list of deep_features in NCHW."""
    x_nhwc = jnp.transpose(first_frame_nchw, (0, 2, 3, 1))
    N = x_nhwc.shape[0]
    feat = x_nhwc.astype(jnp.bfloat16)         # true channel count carried (bf16)
    deep_features = []
    for (w, b, wz, bz), down in zip(params, downsamples):
        stride = 2 if down else 1
        co, ci = w.shape[0], w.shape[1]
        assert feat.shape[-1] == ci
        cop = _round_up(co, 128)
        K = 9 * ci
        k_pad = _round_up(K, 128)              # pad K as a whole, not C_in

        # conv weight [Co,Ci,3,3] -> [kh,kw,Ci,Co_pad] -> [9*Ci, Co_pad] -> K pad
        w_t = jnp.transpose(w, (2, 3, 1, 0))
        w_t = jnp.pad(w_t, ((0, 0), (0, 0), (0, 0), (0, cop - co)))
        w1_mat = w_t.reshape(K, cop)
        w1_mat = jnp.pad(w1_mat, ((0, k_pad - K), (0, 0))).astype(jnp.bfloat16)
        b1 = jnp.pad(b, (0, cop - co)).reshape(1, cop).astype(jnp.float32)
        wz_mat = jnp.pad(wz[:, :, 0, 0].T,
                         ((0, cop - co), (0, cop - co))).astype(jnp.bfloat16)
        bz1 = jnp.pad(bz, (0, cop - co)).reshape(1, cop).astype(jnp.float32)

        patches, Ho, Wo = _im2col_3x3(feat, stride, k_pad)    # [M, k_pad] bf16
        feat_flat, zout_flat = _encoder_layer_pallas(patches, w1_mat, b1,
                                                     wz_mat, bz1)
        feat = feat_flat.reshape(N, Ho, Wo, cop)[..., :co]    # true channels
        zout = zout_flat.reshape(N, Ho, Wo, cop)[..., :co]
        deep_features.append(
            jnp.transpose(zout, (0, 3, 1, 2)).astype(first_frame_nchw.dtype))
    return deep_features


# ---------------------------------------------------------------------------
# Pure-JAX reference (for correctness check)
# ---------------------------------------------------------------------------
def _ref_forward(x_nchw, params, downsamples):
    feat = x_nchw
    outs = []
    for (w, b, wz, bz), down in zip(params, downsamples):
        s = 2 if down else 1
        y = jax.lax.conv_general_dilated(
            feat, w, window_strides=(s, s), padding=((1, 1), (1, 1)),
            dimension_numbers=('NCHW', 'OIHW', 'NCHW')) + b.reshape(1, -1, 1, 1)
        feat = y * jax.nn.sigmoid(y)
        z = jax.lax.conv_general_dilated(
            feat, wz, window_strides=(1, 1), padding=((0, 0), (0, 0)),
            dimension_numbers=('NCHW', 'OIHW', 'NCHW')) + bz.reshape(1, -1, 1, 1)
        outs.append(z)
    return outs


if __name__ == "__main__":
    key = jax.random.PRNGKey(0)
    kx, kp, kz = jax.random.split(key, 3)

    # Small shapes consistent with the module structure (3 downsampling stages).
    B, C_IN, H, W = 2, 8, 16, 16
    CHANNELS = [8, 16, 32]
    DOWNSAMPLES = [True, True, True]

    x = jax.random.normal(kx, (B, C_IN, H, W), jnp.float32)
    params = init_params(kp, C_IN, CHANNELS)

    fwd = jax.jit(functools.partial(flow_controlnet_first_frame_encoder,
                                    params=params, downsamples=DOWNSAMPLES))
    deep_features = [jax.block_until_ready(f) for f in fwd(x)]

    # Shape check: [B, Ck, H/2^(k+1), W/2^(k+1)]
    expected_shapes = [(B, 8, 8, 8), (B, 16, 4, 4), (B, 32, 2, 2)]
    assert [tuple(f.shape) for f in deep_features] == expected_shapes, \
        [tuple(f.shape) for f in deep_features]

    # Module-faithful check (zero-conv weights are zero -> outputs exactly 0).
    refs = _ref_forward(x, params, DOWNSAMPLES)
    for got, ref in zip(deep_features, refs):
        assert jnp.allclose(got, ref, atol=1e-3, rtol=1e-3), \
            float(jnp.max(jnp.abs(got - ref)))

    # Stronger check: non-zero "zero-conv" weights exercise both fused matmuls
    # (bf16 MXU path + bf16 output vs. f32 reference -> loose tolerance).
    params_nz = []
    for (w, b, wz, bz) in params:
        kz, k1, k2 = jax.random.split(kz, 3)
        co = w.shape[0]
        params_nz.append(
            (w, b,
             jax.random.normal(k1, (co, co, 1, 1), jnp.float32) * 0.05,
             jax.random.normal(k2, (co,), jnp.float32) * 0.05))
    fwd_nz = jax.jit(functools.partial(flow_controlnet_first_frame_encoder,
                                       params=params_nz,
                                       downsamples=DOWNSAMPLES))
    got_nz = [jax.block_until_ready(f) for f in fwd_nz(x)]
    ref_nz = _ref_forward(x, params_nz, DOWNSAMPLES)
    for got, ref in zip(got_nz, ref_nz):
        err = float(jnp.max(jnp.abs(got - ref)))
        assert err < 2.5e-2, err

    print("KERNEL_OK")
</pallas_src>

<mosaic_0001>
module attributes {stable_mosaic.version = 11 : i64} {
  func.func @_encoder_layer_kernel(%arg0: i32, %arg1: i32, %arg2: memref<128x128xbf16, #tpu.memory_space<vmem>>, %arg3: memref<128x128xbf16, #tpu.memory_space<vmem>>, %arg4: memref<1x128xf32, #tpu.memory_space<vmem>>, %arg5: memref<128x128xbf16, #tpu.memory_space<vmem>>, %arg6: memref<1x128xf32, #tpu.memory_space<vmem>>, %arg7: memref<128x128xbf16, #tpu.memory_space<vmem>>, %arg8: memref<128x128xbf16, #tpu.memory_space<vmem>>, %arg9: memref<128x128xf32, #tpu.memory_space<vmem>>) attributes {dimension_semantics = [#tpu.dimension_semantics<parallel>, #tpu.dimension_semantics<arbitrary>], iteration_bounds = array<i64: 1, 1>, scalar_prefetch = 0 : i64, scratch_operands = 1 : i64, tpu.core_type = #tpu.core_type<tc>, window_params = [{transform_indices = @transform_0, window_bounds = array<i64: 128, 128>}, {pipeline_mode = #tpu.pipeline_mode<synchronous>, transform_indices = @transform_1, window_bounds = array<i64: 128, 128>}, {pipeline_mode = #tpu.pipeline_mode<synchronous>, transform_indices = @transform_2, window_bounds = array<i64: 1, 128>}, {pipeline_mode = #tpu.pipeline_mode<synchronous>, transform_indices = @transform_3, window_bounds = array<i64: 128, 128>}, {pipeline_mode = #tpu.pipeline_mode<synchronous>, transform_indices = @transform_4, window_bounds = array<i64: 1, 128>}, {transform_indices = @transform_5, window_bounds = array<i64: 128, 128>}, {transform_indices = @transform_6, window_bounds = array<i64: 128, 128>}]} {
    %c0_i32 = arith.constant 0 : i32
    %0 = arith.cmpi eq, %arg1, %c0_i32 : i32
    %1 = arith.extui %0 : i1 to i32
    %c0_i32_0 = arith.constant 0 : i32
    %2 = arith.cmpi ne, %1, %c0_i32_0 : i32
    scf.if %2 {
      %cst_10 = arith.constant 0.000000e+00 : f32
      %12 = vector.broadcast %cst_10 : f32 to vector<128x128xf32>
      %c0_11 = arith.constant 0 : index
      %c0_12 = arith.constant 0 : index
      %13 = vector.load %arg9[%c0_11, %c0_12] : memref<128x128xf32, #tpu.memory_space<vmem>>, vector<128x128xf32>
      tpu.vector_store %arg9[%c0_11, %c0_12], %12 {strides = array<i32>} : memref<128x128xf32, #tpu.memory_space<vmem>>, vector<128x128xf32>,
    } else {
    }
    %c0 = arith.constant 0 : index
    %c0_1 = arith.constant 0 : index
    %3 = vector.load %arg9[%c0, %c0_1] : memref<128x128xf32, #tpu.memory_space<vmem>>, vector<128x128xf32>
    %c0_2 = arith.constant 0 : index
    %c0_3 = arith.constant 0 : index
    %4 = vector.load %arg2[%c0_2, %c0_3] : memref<128x128xbf16, #tpu.memory_space<vmem>>, vector<128x128xbf16>
    %c0_4 = arith.constant 0 : index
    %c0_5 = arith.constant 0 : index
    %5 = vector.load %arg3[%c0_4, %c0_5] : memref<128x128xbf16, #tpu.memory_space<vmem>>, vector<128x128xbf16>
    %cst = arith.constant dense<0.000000e+00> : vector<128x128xf32>
    %6 = tpu.matmul %4, %5, %cst {dimension_numbers = #tpu.dot_dimension_numbers<[1], [0], [0], [1], [0, 0, 1, 1], [], []>} : vector<128x128xbf16>, vector<128x128xbf16>, vector<128x128xf32> -> vector<128x128xf32>
    %7 = arith.addf %3, %6 : vector<128x128xf32>
    %c0_6 = arith.constant 0 : index
    %c0_7 = arith.constant 0 : index
    %8 = vector.load %arg9[%c0_6, %c0_7] : memref<128x128xf32, #tpu.memory_space<vmem>>, vector<128x128xf32>
    tpu.vector_store %arg9[%c0_6, %c0_7], %7 {strides = array<i32>} : memref<128x128xf32, #tpu.memory_space<vmem>>, vector<128x128xf32>,
    %c0_i32_8 = arith.constant 0 : i32
    %9 = arith.cmpi eq, %arg1, %c0_i32_8 : i32
    %10 = arith.extui %9 : i1 to i32
    %c0_i32_9 = arith.constant 0 : i32
    %11 = arith.cmpi ne, %10, %c0_i32_9 : i32
    scf.if %11 {
      %c0_10 = arith.constant 0 : index
      %c0_11 = arith.constant 0 : index
      %12 = vector.load %arg9[%c0_10, %c0_11] : memref<128x128xf32, #tpu.memory_space<vmem>>, vector<128x128xf32>
      %c0_12 = arith.constant 0 : index
      %c0_13 = arith.constant 0 : index
      %13 = vector.load %arg4[%c0_12, %c0_13] : memref<1x128xf32, #tpu.memory_space<vmem>>, vector<1x128xf32>
      %14 = vector.broadcast %13 : vector<1x128xf32> to vector<128x128xf32>
      %15 = arith.addf %12, %14 : vector<128x128xf32>
      %cst_14 = arith.constant 0.000000e+00 : f32
      %16 = vector.broadcast %cst_14 : f32 to vector<128x128xf32>
      %17 = arith.subf %16, %15 : vector<128x128xf32>
      %18 = math.exp %17 : vector<128x128xf32>
      %cst_15 = arith.constant 1.000000e+00 : f32
      %19 = vector.broadcast %cst_15 : f32 to vector<128x128xf32>
      %20 = arith.addf %19, %18 : vector<128x128xf32>
      %21 = tpu.reciprocal %20 {approx = true} : vector<128x128xf32> -> vector<128x128xf32>
      %22 = arith.mulf %15, %21 : vector<128x128xf32>
      %23 = arith.truncf %22 : vector<128x128xf32> to vector<128x128xbf16>
      %c0_16 = arith.constant 0 : index
      %c0_17 = arith.constant 0 : index
      %24 = vector.load %arg7[%c0_16, %c0_17] : memref<128x128xbf16, #tpu.memory_space<vmem>>, vector<128x128xbf16>
      tpu.vector_store %arg7[%c0_16, %c0_17], %23 {strides = array<i32>} : memref<128x128xbf16, #tpu.memory_space<vmem>>, vector<128x128xbf16>,
      %c0_18 = arith.constant 0 : index
      %c0_19 = arith.constant 0 : index
      %25 = vector.load %arg5[%c0_18, %c0_19] : memref<128x128xbf16, #tpu.memory_space<vmem>>, vector<128x128xbf16>
      %cst_20 = arith.constant dense<0.000000e+00> : vector<128x128xf32>
      %26 = tpu.matmul %23, %25, %cst_20 {dimension_numbers = #tpu.dot_dimension_numbers<[1], [0], [0], [1], [0, 0, 1, 1], [], []>} : vector<128x128xbf16>, vector<128x128xbf16>, vector<128x128xf32> -> vector<128x128xf32>
      %c0_21 = arith.constant 0 : index
      %c0_22 = arith.constant 0 : index
      %27 = vector.load %arg6[%c0_21, %c0_22] : memref<1x128xf32, #tpu.memory_space<vmem>>, vector<1x128xf32>
      %28 = vector.broadcast %27 : vector<1x128xf32> to vector<128x128xf32>
      %29 = arith.addf %26, %28 : vector<128x128xf32>
      %30 = arith.truncf %29 : vector<128x128xf32> to vector<128x128xbf16>
      %c0_23 = arith.constant 0 : index
      %c0_24 = arith.constant 0 : index
      %31 = vector.load %arg8[%c0_23, %c0_24] : memref<128x128xbf16, #tpu.memory_space<vmem>>, vector<128x128xbf16>
      tpu.vector_store %arg8[%c0_23, %c0_24], %30 {strides = array<i32>} : memref<128x128xbf16, #tpu.memory_space<vmem>>, vector<128x128xbf16>,
    } else {
    }
    return
  }
  func.func @transform_0(%arg0: i32, %arg1: i32) -> (i32, i32) {
    %c0_i32 = arith.constant 0 : i32
    return %arg0, %arg1 : i32, i32
  }
  func.func @transform_1(%arg0: i32, %arg1: i32) -> (i32, i32) {
    %c0_i32 = arith.constant 0 : i32
    %c0_i32_0 = arith.constant 0 : i32
    return %arg1, %c0_i32 : i32, i32
  }
  func.func @transform_2(%arg0: i32, %arg1: i32) -> (i32, i32) {
    %c0_i32 = arith.constant 0 : i32
    %c0_i32_0 = arith.constant 0 : i32
    %c0_i32_1 = arith.constant 0 : i32
    return %c0_i32, %c0_i32_0 : i32, i32
  }
  func.func @transform_3(%arg0: i32, %arg1: i32) -> (i32, i32) {
    %c0_i32 = arith.constant 0 : i32
    %c0_i32_0 = arith.constant 0 : i32
    %c0_i32_1 = arith.constant 0 : i32
    return %c0_i32, %c0_i32_0 : i32, i32
  }
  func.func @transform_4(%arg0: i32, %arg1: i32) -> (i32, i32) {
    %c0_i32 = arith.constant 0 : i32
    %c0_i32_0 = arith.constant 0 : i32
    %c0_i32_1 = arith.constant 0 : i32
    return %c0_i32, %c0_i32_0 : i32, i32
  }
  func.func @transform_5(%arg0: i32, %arg1: i32) -> (i32, i32) {
    %c0_i32 = arith.constant 0 : i32
    %c0_i32_0 = arith.constant 0 : i32
    return %arg0, %c0_i32 : i32, i32
  }
  func.func @transform_6(%arg0: i32, %arg1: i32) -> (i32, i32) {
    %c0_i32 = arith.constant 0 : i32
    %c0_i32_0 = arith.constant 0 : i32
    return %arg0, %c0_i32 : i32, i32
  }
}

module attributes {stable_mosaic.version = 11 : i64} {
  func.func @_encoder_layer_kernel(%arg0: i32, %arg1: i32, %arg2: memref<32x128xbf16, #tpu.memory_space<vmem>>, %arg3: memref<128x128xbf16, #tpu.memory_space<vmem>>, %arg4: memref<1x128xf32, #tpu.memory_space<vmem>>, %arg5: memref<128x128xbf16, #tpu.memory_space<vmem>>, %arg6: memref<1x128xf32, #tpu.memory_space<vmem>>, %arg7: memref<32x128xbf16, #tpu.memory_space<vmem>>, %arg8: memref<32x128xbf16, #tpu.memory_space<vmem>>, %arg9: memref<32x128xf32, #tpu.memory_space<vmem>>) attributes {dimension_semantics = [#tpu.dimension_semantics<parallel>, #tpu.dimension_semantics<arbitrary>], iteration_bounds = array<i64: 1, 1>, scalar_prefetch = 0 : i64, scratch_operands = 1 : i64, tpu.core_type = #tpu.core_type<tc>, window_params = [{transform_indices = @transform_0, window_bounds = array<i64: 32, 128>}, {pipeline_mode = #tpu.pipeline_mode<synchronous>, transform_indices = @transform_1, window_bounds = array<i64: 128, 128>}, {pipeline_mode = #tpu.pipeline_mode<synchronous>, transform_indices = @transform_2, window_bounds = array<i64: 1, 128>}, {pipeline_mode = #tpu.pipeline_mode<synchronous>, transform_indices = @transform_3, window_bounds = array<i64: 128, 128>}, {pipeline_mode = #tpu.pipeline_mode<synchronous>, transform_indices = @transform_4, window_bounds = array<i64: 1, 128>}, {transform_indices = @transform_5, window_bounds = array<i64: 32, 128>}, {transform_indices = @transform_6, window_bounds = array<i64: 32, 128>}]} {
    %c0_i32 = arith.constant 0 : i32
    %0 = arith.cmpi eq, %arg1, %c0_i32 : i32
    %1 = arith.extui %0 : i1 to i32
    %c0_i32_0 = arith.constant 0 : i32
    %2 = arith.cmpi ne, %1, %c0_i32_0 : i32
    scf.if %2 {
      %cst_10 = arith.constant 0.000000e+00 : f32
      %12 = vector.broadcast %cst_10 : f32 to vector<32x128xf32>
      %c0_11 = arith.constant 0 : index
      %c0_12 = arith.constant 0 : index
      %13 = vector.load %arg9[%c0_11, %c0_12] : memref<32x128xf32, #tpu.memory_space<vmem>>, vector<32x128xf32>
      tpu.vector_store %arg9[%c0_11, %c0_12], %12 {strides = array<i32>} : memref<32x128xf32, #tpu.memory_space<vmem>>, vector<32x128xf32>,
    } else {
    }
    %c0 = arith.constant 0 : index
    %c0_1 = arith.constant 0 : index
    %3 = vector.load %arg9[%c0, %c0_1] : memref<32x128xf32, #tpu.memory_space<vmem>>, vector<32x128xf32>
    %c0_2 = arith.constant 0 : index
    %c0_3 = arith.constant 0 : index
    %4 = vector.load %arg2[%c0_2, %c0_3] : memref<32x128xbf16, #tpu.memory_space<vmem>>, vector<32x128xbf16>
    %c0_4 = arith.constant 0 : index
    %c0_5 = arith.constant 0 : index
    %5 = vector.load %arg3[%c0_4, %c0_5] : memref<128x128xbf16, #tpu.memory_space<vmem>>, vector<128x128xbf16>
    %cst = arith.constant dense<0.000000e+00> : vector<32x128xf32>
    %6 = tpu.matmul %4, %5, %cst {dimension_numbers = #tpu.dot_dimension_numbers<[1], [0], [0], [1], [0, 0, 1, 1], [], []>} : vector<32x128xbf16>, vector<128x128xbf16>, vector<32x128xf32> -> vector<32x128xf32>
    %7 = arith.addf %3, %6 : vector<32x128xf32>
    %c0_6 = arith.constant 0 : index
    %c0_7 = arith.constant 0 : index
    %8 = vector.load %arg9[%c0_6, %c0_7] : memref<32x128xf32, #tpu.memory_space<vmem>>, vector<32x128xf32>
    tpu.vector_store %arg9[%c0_6, %c0_7], %7 {strides = array<i32>} : memref<32x128xf32, #tpu.memory_space<vmem>>, vector<32x128xf32>,
    %c0_i32_8 = arith.constant 0 : i32
    %9 = arith.cmpi eq, %arg1, %c0_i32_8 : i32
    %10 = arith.extui %9 : i1 to i32
    %c0_i32_9 = arith.constant 0 : i32
    %11 = arith.cmpi ne, %10, %c0_i32_9 : i32
    scf.if %11 {
      %c0_10 = arith.constant 0 : index
      %c0_11 = arith.constant 0 : index
      %12 = vector.load %arg9[%c0_10, %c0_11] : memref<32x128xf32, #tpu.memory_space<vmem>>, vector<32x128xf32>
      %c0_12 = arith.constant 0 : index
      %c0_13 = arith.constant 0 : index
      %13 = vector.load %arg4[%c0_12, %c0_13] : memref<1x128xf32, #tpu.memory_space<vmem>>, vector<1x128xf32>
      %14 = vector.broadcast %13 : vector<1x128xf32> to vector<32x128xf32>
      %15 = arith.addf %12, %14 : vector<32x128xf32>
      %cst_14 = arith.constant 0.000000e+00 : f32
      %16 = vector.broadcast %cst_14 : f32 to vector<32x128xf32>
      %17 = arith.subf %16, %15 : vector<32x128xf32>
      %18 = math.exp %17 : vector<32x128xf32>
      %cst_15 = arith.constant 1.000000e+00 : f32
      %19 = vector.broadcast %cst_15 : f32 to vector<32x128xf32>
      %20 = arith.addf %19, %18 : vector<32x128xf32>
      %21 = tpu.reciprocal %20 {approx = true} : vector<32x128xf32> -> vector<32x128xf32>
      %22 = arith.mulf %15, %21 : vector<32x128xf32>
      %23 = arith.truncf %22 : vector<32x128xf32> to vector<32x128xbf16>
      %c0_16 = arith.constant 0 : index
      %c0_17 = arith.constant 0 : index
      %24 = vector.load %arg7[%c0_16, %c0_17] : memref<32x128xbf16, #tpu.memory_space<vmem>>, vector<32x128xbf16>
      tpu.vector_store %arg7[%c0_16, %c0_17], %23 {strides = array<i32>} : memref<32x128xbf16, #tpu.memory_space<vmem>>, vector<32x128xbf16>,
      %c0_18 = arith.constant 0 : index
      %c0_19 = arith.constant 0 : index
      %25 = vector.load %arg5[%c0_18, %c0_19] : memref<128x128xbf16, #tpu.memory_space<vmem>>, vector<128x128xbf16>
      %cst_20 = arith.constant dense<0.000000e+00> : vector<32x128xf32>
      %26 = tpu.matmul %23, %25, %cst_20 {dimension_numbers = #tpu.dot_dimension_numbers<[1], [0], [0], [1], [0, 0, 1, 1], [], []>} : vector<32x128xbf16>, vector<128x128xbf16>, vector<32x128xf32> -> vector<32x128xf32>
      %c0_21 = arith.constant 0 : index
      %c0_22 = arith.constant 0 : index
      %27 = vector.load %arg6[%c0_21, %c0_22] : memref<1x128xf32, #tpu.memory_space<vmem>>, vector<1x128xf32>
      %28 = vector.broadcast %27 : vector<1x128xf32> to vector<32x128xf32>
      %29 = arith.addf %26, %28 : vector<32x128xf32>
      %30 = arith.truncf %29 : vector<32x128xf32> to vector<32x128xbf16>
      %c0_23 = arith.constant 0 : index
      %c0_24 = arith.constant 0 : index
      %31 = vector.load %arg8[%c0_23, %c0_24] : memref<32x128xbf16, #tpu.memory_space<vmem>>, vector<32x128xbf16>
      tpu.vector_store %arg8[%c0_23, %c0_24], %30 {strides = array<i32>} : memref<32x128xbf16, #tpu.memory_space<vmem>>, vector<32x128xbf16>,
    } else {
    }
    return
  }
  func.func @transform_0(%arg0: i32, %arg1: i32) -> (i32, i32) {
    %c0_i32 = arith.constant 0 : i32
    return %arg0, %arg1 : i32, i32
  }
  func.func @transform_1(%arg0: i32, %arg1: i32) -> (i32, i32) {
    %c0_i32 = arith.constant 0 : i32
    %c0_i32_0 = arith.constant 0 : i32
    return %arg1, %c0_i32 : i32, i32
  }
  func.func @transform_2(%arg0: i32, %arg1: i32) -> (i32, i32) {
    %c0_i32 = arith.constant 0 : i32
    %c0_i32_0 = arith.constant 0 : i32
    %c0_i32_1 = arith.constant 0 : i32
    return %c0_i32, %c0_i32_0 : i32, i32
  }
  func.func @transform_3(%arg0: i32, %arg1: i32) -> (i32, i32) {
    %c0_i32 = arith.constant 0 : i32
    %c0_i32_0 = arith.constant 0 : i32
    %c0_i32_1 = arith.constant 0 : i32
    return %c0_i32, %c0_i32_0 : i32, i32
  }
  func.func @transform_4(%arg0: i32, %arg1: i32) -> (i32, i32) {
    %c0_i32 = arith.constant 0 : i32
    %c0_i32_0 = arith.constant 0 : i32
    %c0_i32_1 = arith.constant 0 : i32
    return %c0_i32, %c0_i32_0 : i32, i32
  }
  func.func @transform_5(%arg0: i32, %arg1: i32) -> (i32, i32) {
    %c0_i32 = arith.constant 0 : i32
    %c0_i32_0 = arith.constant 0 : i32
    return %arg0, %c0_i32 : i32, i32
  }
  func.func @transform_6(%arg0: i32, %arg1: i32) -> (i32, i32) {
    %c0_i32 = arith.constant 0 : i32
    %c0_i32_0 = arith.constant 0 : i32
    return %arg0, %c0_i32 : i32, i32
  }
}

module attributes {stable_mosaic.version = 11 : i64} {
  func.func @_encoder_layer_kernel(%arg0: i32, %arg1: i32, %arg2: memref<8x256xbf16, #tpu.memory_space<vmem>>, %arg3: memref<256x128xbf16, #tpu.memory_space<vmem>>, %arg4: memref<1x128xf32, #tpu.memory_space<vmem>>, %arg5: memref<128x128xbf16, #tpu.memory_space<vmem>>, %arg6: memref<1x128xf32, #tpu.memory_space<vmem>>, %arg7: memref<8x128xbf16, #tpu.memory_space<vmem>>, %arg8: memref<8x128xbf16, #tpu.memory_space<vmem>>, %arg9: memref<8x128xf32, #tpu.memory_space<vmem>>) attributes {dimension_semantics = [#tpu.dimension_semantics<parallel>, #tpu.dimension_semantics<arbitrary>], iteration_bounds = array<i64: 1, 1>, scalar_prefetch = 0 : i64, scratch_operands = 1 : i64, tpu.core_type = #tpu.core_type<tc>, window_params = [{transform_indices = @transform_0, window_bounds = array<i64: 8, 256>}, {pipeline_mode = #tpu.pipeline_mode<synchronous>, transform_indices = @transform_1, window_bounds = array<i64: 256, 128>}, {pipeline_mode = #tpu.pipeline_mode<synchronous>, transform_indices = @transform_2, window_bounds = array<i64: 1, 128>}, {pipeline_mode = #tpu.pipeline_mode<synchronous>, transform_indices = @transform_3, window_bounds = array<i64: 128, 128>}, {pipeline_mode = #tpu.pipeline_mode<synchronous>, transform_indices = @transform_4, window_bounds = array<i64: 1, 128>}, {transform_indices = @transform_5, window_bounds = array<i64: 8, 128>}, {transform_indices = @transform_6, window_bounds = array<i64: 8, 128>}]} {
    %c0_i32 = arith.constant 0 : i32
    %0 = arith.cmpi eq, %arg1, %c0_i32 : i32
    %1 = arith.extui %0 : i1 to i32
    %c0_i32_0 = arith.constant 0 : i32
    %2 = arith.cmpi ne, %1, %c0_i32_0 : i32
    scf.if %2 {
      %cst_10 = arith.constant 0.000000e+00 : f32
      %12 = vector.broadcast %cst_10 : f32 to vector<8x128xf32>
      %c0_11 = arith.constant 0 : index
      %c0_12 = arith.constant 0 : index
      %13 = vector.load %arg9[%c0_11, %c0_12] : memref<8x128xf32, #tpu.memory_space<vmem>>, vector<8x128xf32>
      tpu.vector_store %arg9[%c0_11, %c0_12], %12 {strides = array<i32>} : memref<8x128xf32, #tpu.memory_space<vmem>>, vector<8x128xf32>,
    } else {
    }
    %c0 = arith.constant 0 : index
    %c0_1 = arith.constant 0 : index
    %3 = vector.load %arg9[%c0, %c0_1] : memref<8x128xf32, #tpu.memory_space<vmem>>, vector<8x128xf32>
    %c0_2 = arith.constant 0 : index
    %c0_3 = arith.constant 0 : index
    %4 = vector.load %arg2[%c0_2, %c0_3] : memref<8x256xbf16, #tpu.memory_space<vmem>>, vector<8x256xbf16>
    %c0_4 = arith.constant 0 : index
    %c0_5 = arith.constant 0 : index
    %5 = vector.load %arg3[%c0_4, %c0_5] : memref<256x128xbf16, #tpu.memory_space<vmem>>, vector<256x128xbf16>
    %cst = arith.constant dense<0.000000e+00> : vector<8x128xf32>
    %6 = tpu.matmul %4, %5, %cst {dimension_numbers = #tpu.dot_dimension_numbers<[1], [0], [0], [1], [0, 0, 1, 1], [], []>} : vector<8x256xbf16>, vector<256x128xbf16>, vector<8x128xf32> -> vector<8x128xf32>
    %7 = arith.addf %3, %6 : vector<8x128xf32>
    %c0_6 = arith.constant 0 : index
    %c0_7 = arith.constant 0 : index
    %8 = vector.load %arg9[%c0_6, %c0_7] : memref<8x128xf32, #tpu.memory_space<vmem>>, vector<8x128xf32>
    tpu.vector_store %arg9[%c0_6, %c0_7], %7 {strides = array<i32>} : memref<8x128xf32, #tpu.memory_space<vmem>>, vector<8x128xf32>,
    %c0_i32_8 = arith.constant 0 : i32
    %9 = arith.cmpi eq, %arg1, %c0_i32_8 : i32
    %10 = arith.extui %9 : i1 to i32
    %c0_i32_9 = arith.constant 0 : i32
    %11 = arith.cmpi ne, %10, %c0_i32_9 : i32
    scf.if %11 {
      %c0_10 = arith.constant 0 : index
      %c0_11 = arith.constant 0 : index
      %12 = vector.load %arg9[%c0_10, %c0_11] : memref<8x128xf32, #tpu.memory_space<vmem>>, vector<8x128xf32>
      %c0_12 = arith.constant 0 : index
      %c0_13 = arith.constant 0 : index
      %13 = vector.load %arg4[%c0_12, %c0_13] : memref<1x128xf32, #tpu.memory_space<vmem>>, vector<1x128xf32>
      %14 = vector.broadcast %13 : vector<1x128xf32> to vector<8x128xf32>
      %15 = arith.addf %12, %14 : vector<8x128xf32>
      %cst_14 = arith.constant 0.000000e+00 : f32
      %16 = vector.broadcast %cst_14 : f32 to vector<8x128xf32>
      %17 = arith.subf %16, %15 : vector<8x128xf32>
      %18 = math.exp %17 : vector<8x128xf32>
      %cst_15 = arith.constant 1.000000e+00 : f32
      %19 = vector.broadcast %cst_15 : f32 to vector<8x128xf32>
      %20 = arith.addf %19, %18 : vector<8x128xf32>
      %21 = tpu.reciprocal %20 {approx = true} : vector<8x128xf32> -> vector<8x128xf32>
      %22 = arith.mulf %15, %21 : vector<8x128xf32>
      %23 = arith.truncf %22 : vector<8x128xf32> to vector<8x128xbf16>
      %c0_16 = arith.constant 0 : index
      %c0_17 = arith.constant 0 : index
      %24 = vector.load %arg7[%c0_16, %c0_17] : memref<8x128xbf16, #tpu.memory_space<vmem>>, vector<8x128xbf16>
      tpu.vector_store %arg7[%c0_16, %c0_17], %23 {strides = array<i32>} : memref<8x128xbf16, #tpu.memory_space<vmem>>, vector<8x128xbf16>,
      %c0_18 = arith.constant 0 : index
      %c0_19 = arith.constant 0 : index
      %25 = vector.load %arg5[%c0_18, %c0_19] : memref<128x128xbf16, #tpu.memory_space<vmem>>, vector<128x128xbf16>
      %cst_20 = arith.constant dense<0.000000e+00> : vector<8x128xf32>
      %26 = tpu.matmul %23, %25, %cst_20 {dimension_numbers = #tpu.dot_dimension_numbers<[1], [0], [0], [1], [0, 0, 1, 1], [], []>} : vector<8x128xbf16>, vector<128x128xbf16>, vector<8x128xf32> -> vector<8x128xf32>
      %c0_21 = arith.constant 0 : index
      %c0_22 = arith.constant 0 : index
      %27 = vector.load %arg6[%c0_21, %c0_22] : memref<1x128xf32, #tpu.memory_space<vmem>>, vector<1x128xf32>
      %28 = vector.broadcast %27 : vector<1x128xf32> to vector<8x128xf32>
      %29 = arith.addf %26, %28 : vector<8x128xf32>
      %30 = arith.truncf %29 : vector<8x128xf32> to vector<8x128xbf16>
      %c0_23 = arith.constant 0 : index
      %c0_24 = arith.constant 0 : index
      %31 = vector.load %arg8[%c0_23, %c0_24] : memref<8x128xbf16, #tpu.memory_space<vmem>>, vector<8x128xbf16>
      tpu.vector_store %arg8[%c0_23, %c0_24], %30 {strides = array<i32>} : memref<8x128xbf16, #tpu.memory_space<vmem>>, vector<8x128xbf16>,
    } else {
    }
    return
  }
  func.func @transform_0(%arg0: i32, %arg1: i32) -> (i32, i32) {
    %c0_i32 = arith.constant 0 : i32
    return %arg0, %arg1 : i32, i32
  }
  func.func @transform_1(%arg0: i32, %arg1: i32) -> (i32, i32) {
    %c0_i32 = arith.constant 0 : i32
    %c0_i32_0 = arith.constant 0 : i32
    return %arg1, %c0_i32 : i32, i32
  }
  func.func @transform_2(%arg0: i32, %arg1: i32) -> (i32, i32) {
    %c0_i32 = arith.constant 0 : i32
    %c0_i32_0 = arith.constant 0 : i32
    %c0_i32_1 = arith.constant 0 : i32
    return %c0_i32, %c0_i32_0 : i32, i32
  }
  func.func @transform_3(%arg0: i32, %arg1: i32) -> (i32, i32) {
    %c0_i32 = arith.constant 0 : i32
    %c0_i32_0 = arith.constant 0 : i32
    %c0_i32_1 = arith.constant 0 : i32
    return %c0_i32, %c0_i32_0 : i32, i32
  }
  func.func @transform_4(%arg0: i32, %arg1: i32) -> (i32, i32) {
    %c0_i32 = arith.constant 0 : i32
    %c0_i32_0 = arith.constant 0 : i32
    %c0_i32_1 = arith.constant 0 : i32
    return %c0_i32, %c0_i32_0 : i32, i32
  }
  func.func @transform_5(%arg0: i32, %arg1: i32) -> (i32, i32) {
    %c0_i32 = arith.constant 0 : i32
    %c0_i32_0 = arith.constant 0 : i32
    return %arg0, %c0_i32 : i32, i32
  }
  func.func @transform_6(%arg0: i32, %arg1: i32) -> (i32, i32) {
    %c0_i32 = arith.constant 0 : i32
    %c0_i32_0 = arith.constant 0 : i32
    return %arg0, %c0_i32 : i32, i32
  }
}

</mosaic_0001>

<bundles_post_ra>
// kernel: flow_controlnet_first_frame_encoder.4
= control target key start
LH: loop header
LB: loop body
LE: loop exit
PB: predicated region body
PF: predicated region fallthrough
CT: control target
= control target key end

     0   :  { %s641_s1 = inlined_call_operand.vmem [shape: bf16[128,128], index: 1, kind: input, shape index: {}]   ;;  %s642_s0 = inlined_call_operand.vmem [shape: bf16[32,128], index: 0, kind: input, shape index: {}]   ;;  %s643_s3 = inlined_call_operand.vmem [shape: bf16[128,128], index: 3, kind: input, shape index: {}]   ;;  %s644_s2 = inlined_call_operand.vmem [shape: f32[1,128], index: 2, kind: input, shape index: {}]   ;;  %s645_s5 = inlined_call_operand.vmem [shape: bf16[32,128], index: 5, kind: output, shape index: {0}]   ;;  %s646_s4 = inlined_call_operand.vmem [shape: f32[1,128], index: 4, kind: input, shape index: {}]   ;;  %s647_s6 = inlined_call_operand.vmem [shape: bf16[32,128], index: 6, kind: output, shape index: {1}]  }
   0x1   :  { %v500_v0 = vld [vmem:[%s641_s1] sm:$0xff]   ;;  %v501_v1 = vld [vmem:[%s641_s1 + $0x8] sm:$0xff]   ;;  %v502_v2 = vld [vmem:[%s641_s1 + $0x10] sm:$0xff]  }
   0x2   :  { %460 = vmatprep.subr.bf16.mxu0 %v500_v0  ;;  %v503_v3 = vld [vmem:[%s641_s1 + $0x18] sm:$0xff]   ;;  %v508_v4 = vld [vmem:[%s642_s0] sm:$0xff]   ;;  %v505_v6 = vld [vmem:[%s641_s1 + $0x28] sm:$0xff]  }
   0x3   :  { %461 = vmatpush3.bf16.msra.mxu0 %v500_v0  ;;  %476 = vmatprep.mubr.bf16.mxu0 %v508_v4  ;;  %v504_v5 = vld [vmem:[%s641_s1 + $0x20] sm:$0xff]   ;;  %v506_v7 = vld [vmem:[%s641_s1 + $0x30] sm:$0xff]   ;;  %v507_v8 = vld [vmem:[%s641_s1 + $0x38] sm:$0xff]  }
   0x4   :  { %462 = vmatprep.subr.bf16.mxu0 %v501_v1  ;;  %v509_v9 = vld [vmem:[%s642_s0 + $0x8] sm:$0xff]   ;;  %v510_v10 = vld [vmem:[%s643_s3] sm:$0xff]   ;;  %v512_v12 = vld [vmem:[%s643_s3 + $0x10] sm:$0xff]  }
   0x5   :  { %480 = vmatprep.subr.bf16.mxu1 %v510_v10  ;;  %v511_v11 = vld [vmem:[%s643_s3 + $0x8] sm:$0xff]   ;;  %v513_v13 = vld [vmem:[%s643_s3 + $0x18] sm:$0xff]   ;;  %v514_v14 = vld [vmem:[%s643_s3 + $0x20] sm:$0xff]  }
   0x6   :  { %481 = vmatpush3.bf16.msra.mxu1 %v510_v10  ;;  %v515_v15 = vld [vmem:[%s643_s3 + $0x28] sm:$0xff]   ;;  %v516_v16 = vld [vmem:[%s643_s3 + $0x30] sm:$0xff]   ;;  %v517_v17 = vld [vmem:[%s643_s3 + $0x38] sm:$0xff]  }
   0x7   :  { %463 = vmatpush3.bf16.msra.mxu0 %v501_v1  ;;  %482 = vmatprep.subr.bf16.mxu1 %v511_v11  ;;  %v392_v18 = vld [vmem:[%s644_s2] ss:$0 sm:$0xff] }
   0x8   :  { %464 = vmatprep.subr.bf16.mxu0 %v502_v2  ;;  %v397_v54 = vld [vmem:[%s646_s4] ss:$0 sm:$0xff] }
   0xa   :  { %483 = vmatpush3.bf16.msra.mxu1 %v511_v11 }
   0xb   :  { %465 = vmatpush3.bf16.msra.mxu0 %v502_v2  ;;  %484 = vmatprep.subr.bf16.mxu1 %v512_v12 }
   0xc   :  { %466 = vmatprep.subr.bf16.mxu0 %v503_v3 }
   0xe   :  { %485 = vmatpush3.bf16.msra.mxu1 %v512_v12 }
   0xf   :  { %467 = vmatpush3.bf16.msra.mxu0 %v503_v3  ;;  %486 = vmatprep.subr.bf16.mxu1 %v513_v13 }
  0x10   :  { %468 = vmatprep.subr.bf16.mxu0 %v504_v5 }
  0x12   :  { %487 = vmatpush3.bf16.msra.mxu1 %v513_v13 }
  0x13   :  { %469 = vmatpush3.bf16.msra.mxu0 %v504_v5  ;;  %488 = vmatprep.subr.bf16.mxu1 %v514_v14 }
  0x14   :  { %470 = vmatprep.subr.bf16.mxu0 %v505_v6 }
  0x16   :  { %489 = vmatpush3.bf16.msra.mxu1 %v514_v14 }
  0x17   :  { %471 = vmatpush3.bf16.msra.mxu0 %v505_v6  ;;  %490 = vmatprep.subr.bf16.mxu1 %v515_v15 }
  0x18   :  { %472 = vmatprep.subr.bf16.mxu0 %v506_v7 }
  0x1a   :  { %491 = vmatpush3.bf16.msra.mxu1 %v515_v15 }
  0x1b   :  { %473 = vmatpush3.bf16.msra.mxu0 %v506_v7  ;;  %492 = vmatprep.subr.bf16.mxu1 %v516_v16 }
  0x1c   :  { %474 = vmatprep.subr.bf16.mxu0 %v507_v8 }
  0x1e   :  { %493 = vmatpush3.bf16.msra.mxu1 %v516_v16 }
  0x1f   :  { %475 = vmatpush3.bf16.msra.mxu0 %v507_v8  ;;  %494 = vmatprep.subr.bf16.mxu1 %v517_v17 }
  0x22   :  { %477 = vmatmul.mubr.bf16.vlgmr.msra.gmra.mrb[0].mxu0 %v509_v9  ;;  %495 = vmatpush3.bf16.msra.mxu1 %v517_v17 }
  0xf5   :  { %v478_v19 = vpop.f32.mrb[0].mxu0 }
  0xf6   :  { %v188_v20 = vadd.f32 %v478_v19, %v392_v18  ;;  %v149_v21 = vpop.f32.mrb[1].mxu0 }
  0xf7   :  { %v186_v22 = vadd.f32 %v392_v18, %v149_v21  ;;  %v479_v23 = vpop.f32.mrb[2].mxu0 }
  0xf8   :  { %v192_v24 = vsub.f32 0.0, %v188_v20  ;;  %v189_v25 = vadd.f32 %v479_v23, %v392_v18  ;;  %v152_v26 = vpop.f32.mrb[3].mxu0 }
  0xf9   :  { %v190_v27 = vsub.f32 0.0, %v186_v22  ;;  %v187_v28 = vadd.f32 %v392_v18, %v152_v26 }
  0xfa   :  { %v198_v29 = vmul.f32 1.442695, %v192_v24  ;;  %v193_v30 = vsub.f32 0.0, %v189_v25 }
  0xfb   :  { %v194_v31 = vmul.f32 1.442695, %v190_v27  ;;  %v191_v32 = vsub.f32 0.0, %v187_v28 }
  0xfc   :  { %518 = vpow2.f32 %v198_v29  ;;  %v200_v33 = vmul.f32 1.442695, %v193_v30 }
  0xfd   :  { %520 = vpow2.f32 %v194_v31  ;;  %v196_v34 = vmul.f32 1.442695, %v191_v32 }
  0xfe   :  { %522 = vpow2.f32 %v200_v33 }
  0xff   :  { %524 = vpow2.f32 %v196_v34 }
 0x106   :  { %v519_v35 = vpop.eup %518 }
 0x107   :  { %v521_v36 = vpop.eup %520  ;;  %v204_v37 = vadd.f32 1.0, %v519_v35 }
 0x108   :  { %v523_v38 = vpop.eup %522  ;;  %v202_v39 = vadd.f32 1.0, %v521_v36 }
 0x109   :  { %v525_v40 = vpop.eup %524  ;;  %526 = vrcp.f32 %v204_v37  ;;  %v205_v41 = vadd.f32 1.0, %v523_v38 }
 0x10a   :  { %528 = vrcp.f32 %v202_v39  ;;  %v203_v42 = vadd.f32 1.0, %v525_v40 }
 0x10b   :  { %530 = vrcp.f32 %v205_v41 }
 0x10c   :  { %532 = vrcp.f32 %v203_v42 }
 0x113   :  { %v527_v43 = vpop.eup %526 }
 0x114   :  { %v529_v44 = vpop.eup %528  ;;  %v212_v47 = vmul.f32 %v527_v43, %v188_v20 }
 0x115   :  { %v531_v45 = vpop.eup %530  ;;  %v210_v49 = vmul.f32 %v529_v44, %v186_v22 }
 0x116   :  { %v533_v46 = vpop.eup %532  ;;  %v213_v48 = vmul.f32 %v531_v45, %v189_v25 }
 0x117   :  { %v211_v50 = vmul.f32 %v533_v46, %v187_v28 }
 0x118   :  { %v215_v51 = vpack.c.bf16 %v213_v48, %v212_v47 }
 0x119   :  { %v214_v52 = vpack.c.bf16 %v211_v50, %v210_v49 }
 0x11a   :  { %438 = vst [vmem:[%s645_s5 + $0x8] sm:$0xff] %v215_v51  }
 0x11b   :  { %422 = vst [vmem:[%s645_s5] sm:$0xff] %v214_v52   ;;  %496 = vmatprep.mubr.bf16.mxu1 %v214_v52 }
 0x11c   :  { %497 = vmatmul.mubr.bf16.vlgmr.msra.gmra.mrb[0].mxu1 %v215_v51 }
 0x1ef   :  { %v498_v53 = vpop.f32.mrb[0].mxu1 }
 0x1f0   :  { %v339_v55 = vpop.f32.mrb[1].mxu1  ;;  %v348_v57 = vadd.f32 %v498_v53, %v397_v54 }
 0x1f1   :  { %v499_v56 = vpop.f32.mrb[2].mxu1  ;;  %v340_v60 = vadd.f32 %v397_v54, %v339_v55 }
 0x1f2   :  { %v351_v58 = vadd.f32 %v499_v56, %v397_v54  ;;  %v342_v59 = vpop.f32.mrb[3].mxu1 }
 0x1f3   :  { %v343_v61 = vadd.f32 %v397_v54, %v342_v59 }
 0x1f4   :  { %v436_v62 = vpack.c.bf16 %v351_v58, %v348_v57 }
 0x1f5   :  { %v431_v63 = vpack.c.bf16 %v343_v61, %v340_v60 }
 0x1f6   :  { %439 = vst [vmem:[%s647_s6 + $0x8] sm:$0xff] %v436_v62  }
 0x1f7   :  { %432 = vst [vmem:[%s647_s6] sm:$0xff] %v431_v63  }

// kernel: flow_controlnet_first_frame_encoder.3
= control target key start
LH: loop header
LB: loop body
LE: loop exit
PB: predicated region body
PF: predicated region fallthrough
CT: control target
= control target key end

     0   :  { %s1401_s1 = inlined_call_operand.vmem [shape: bf16[128,128], index: 1, kind: input, shape index: {}]   ;;  %s1402_s0 = inlined_call_operand.vmem [shape: bf16[128,128], index: 0, kind: input, shape index: {}]   ;;  %s1403_s3 = inlined_call_operand.vmem [shape: bf16[128,128], index: 3, kind: input, shape index: {}]   ;;  %s1404_s2 = inlined_call_operand.vmem [shape: f32[1,128], index: 2, kind: input, shape index: {}]   ;;  %s1405_s5 = inlined_call_operand.vmem [shape: bf16[128,128], index: 5, kind: output, shape index: {0}]   ;;  %s1406_s4 = inlined_call_operand.vmem [shape: f32[1,128], index: 4, kind: input, shape index: {}]   ;;  %s1407_s6 = inlined_call_operand.vmem [shape: bf16[128,128], index: 6, kind: output, shape index: {1}]  }
   0x1   :  { %v1070_v0 = vld [vmem:[%s1401_s1] sm:$0xff]   ;;  %v1071_v1 = vld [vmem:[%s1401_s1 + $0x8] sm:$0xff]   ;;  %v1072_v2 = vld [vmem:[%s1401_s1 + $0x10] sm:$0xff]  }
   0x2   :  { %1006 = vmatprep.subr.bf16.mxu0 %v1070_v0  ;;  %v1073_v3 = vld [vmem:[%s1401_s1 + $0x18] sm:$0xff]   ;;  %v1078_v4 = vld [vmem:[%s1402_s0] sm:$0xff]   ;;  %v1075_v6 = vld [vmem:[%s1401_s1 + $0x28] sm:$0xff]  }
   0x3   :  { %1007 = vmatpush3.bf16.msra.mxu0 %v1070_v0  ;;  %1022 = vmatprep.mubr.bf16.mxu0 %v1078_v4  ;;  %v1074_v5 = vld [vmem:[%s1401_s1 + $0x20] sm:$0xff]   ;;  %v1076_v7 = vld [vmem:[%s1401_s1 + $0x30] sm:$0xff]   ;;  %v1077_v8 = vld [vmem:[%s1401_s1 + $0x38] sm:$0xff]  }
   0x4   :  { %1008 = vmatprep.subr.bf16.mxu0 %v1071_v1  ;;  %v1079_v9 = vld [vmem:[%s1402_s0 + $0x8] sm:$0xff]   ;;  %v1080_v10 = vld [vmem:[%s1402_s0 + $0x10] sm:$0xff]   ;;  %v1081_v11 = vld [vmem:[%s1402_s0 + $0x18] sm:$0xff]  }
   0x5   :  { %v1082_v12 = vld [vmem:[%s1402_s0 + $0x20] sm:$0xff]   ;;  %v1083_v13 = vld [vmem:[%s1402_s0 + $0x28] sm:$0xff]   ;;  %v1084_v14 = vld [vmem:[%s1402_s0 + $0x30] sm:$0xff]  }
   0x6   :  { %v1085_v15 = vld [vmem:[%s1402_s0 + $0x38] sm:$0xff]   ;;  %v1086_v16 = vld [vmem:[%s1403_s3] sm:$0xff]   ;;  %v1087_v17 = vld [vmem:[%s1403_s3 + $0x8] sm:$0xff]  }
   0x7   :  { %1009 = vmatpush3.bf16.msra.mxu0 %v1071_v1  ;;  %1038 = vmatprep.subr.bf16.mxu1 %v1086_v16  ;;  %v1088_v18 = vld [vmem:[%s1403_s3 + $0x10] sm:$0xff]   ;;  %v1089_v19 = vld [vmem:[%s1403_s3 + $0x18] sm:$0xff]   ;;  %v1090_v20 = vld [vmem:[%s1403_s3 + $0x20] sm:$0xff]  }
   0x8   :  { %1010 = vmatprep.subr.bf16.mxu0 %v1072_v2  ;;  %1039 = vmatpush3.bf16.msra.mxu1 %v1086_v16  ;;  %v1091_v21 = vld [vmem:[%s1403_s3 + $0x28] sm:$0xff]   ;;  %v1092_v22 = vld [vmem:[%s1403_s3 + $0x30] sm:$0xff]   ;;  %v1093_v23 = vld [vmem:[%s1403_s3 + $0x38] sm:$0xff]  }
   0x9   :  { %1040 = vmatprep.subr.bf16.mxu1 %v1087_v17  ;;  %v1268_v24 = vld [vmem:[%s1404_s2] ss:$0 sm:$0xff] }
   0xb   :  { %1011 = vmatpush3.bf16.msra.mxu0 %v1072_v2 }
   0xc   :  { %1012 = vmatprep.subr.bf16.mxu0 %v1073_v3  ;;  %1041 = vmatpush3.bf16.msra.mxu1 %v1087_v17 }
   0xd   :  { %1042 = vmatprep.subr.bf16.mxu1 %v1088_v18 }
   0xf   :  { %1013 = vmatpush3.bf16.msra.mxu0 %v1073_v3 }
  0x10   :  { %1014 = vmatprep.subr.bf16.mxu0 %v1074_v5  ;;  %1043 = vmatpush3.bf16.msra.mxu1 %v1088_v18 }
  0x11   :  { %1044 = vmatprep.subr.bf16.mxu1 %v1089_v19 }
  0x13   :  { %1015 = vmatpush3.bf16.msra.mxu0 %v1074_v5 }
  0x14   :  { %1016 = vmatprep.subr.bf16.mxu0 %v1075_v6  ;;  %1045 = vmatpush3.bf16.msra.mxu1 %v1089_v19 }
  0x15   :  { %1046 = vmatprep.subr.bf16.mxu1 %v1090_v20 }
  0x17   :  { %1017 = vmatpush3.bf16.msra.mxu0 %v1075_v6 }
  0x18   :  { %1018 = vmatprep.subr.bf16.mxu0 %v1076_v7  ;;  %1047 = vmatpush3.bf16.msra.mxu1 %v1090_v20 }
  0x19   :  { %1048 = vmatprep.subr.bf16.mxu1 %v1091_v21 }
  0x1b   :  { %1019 = vmatpush3.bf16.msra.mxu0 %v1076_v7 }
  0x1c   :  { %1020 = vmatprep.subr.bf16.mxu0 %v1077_v8  ;;  %1049 = vmatpush3.bf16.msra.mxu1 %v1091_v21 }
  0x1d   :  { %1050 = vmatprep.subr.bf16.mxu1 %v1092_v22 }
  0x1f   :  { %1021 = vmatpush3.bf16.msra.mxu0 %v1077_v8 }
  0x20   :  { %1051 = vmatpush3.bf16.msra.mxu1 %v1092_v22 }
  0x21   :  { %1052 = vmatprep.subr.bf16.mxu1 %v1093_v23 }
  0x22   :  { %1023 = vmatmul.mubr.bf16.vlgmr.msra.gmra.mrb[0].mxu0 %v1079_v9 }
  0x23   :  { %1026 = vmatprep.mubr.bf16.mxu0 %v1080_v10 }
  0x24   :  { %1053 = vmatpush3.bf16.msra.mxu1 %v1093_v23 }
  0x2a   :  { %1027 = vmatmul.mubr.bf16.gmra.mrb[4].mxu0 %v1081_v11 }
  0x2b   :  { %1030 = vmatprep.mubr.bf16.mxu0 %v1082_v12 }
  0x32   :  { %1031 = vmatmul.mubr.bf16.gmra.mrb[8].mxu0 %v1083_v13 }
  0x33   :  { %1034 = vmatprep.mubr.bf16.mxu0 %v1084_v14 }
  0x3a   :  { %1035 = vmatmul.mubr.bf16.gmra.mrb[12].mxu0 %v1085_v15 }
  0xf5   :  { %v1024_v25 = vpop.f32.mrb[0].mxu0 }
  0xf6   :  { %v1271_v26 = vadd.f32 %v1024_v25, %v1268_v24  ;;  %v221_v27 = vpop.f32.mrb[1].mxu0 }
  0xf7   :  { %v1274_v28 = vadd.f32 %v1268_v24, %v221_v27  ;;  %v1025_v29 = vpop.f32.mrb[2].mxu0 }
  0xf8   :  { %v360_v30 = vsub.f32 0.0, %v1271_v26  ;;  %v1278_v31 = vadd.f32 %v1025_v29, %v1268_v24  ;;  %v224_v32 = vpop.f32.mrb[3].mxu0 }
  0xf9   :  { %v358_v33 = vsub.f32 0.0, %v1274_v28  ;;  %v1282_v34 = vadd.f32 %v1268_v24, %v224_v32 }
  0xfa   :  { %v378_v35 = vmul.f32 1.442695, %v360_v30  ;;  %v361_v36 = vsub.f32 0.0, %v1278_v31 }
  0xfb   :  { %v374_v37 = vmul.f32 1.442695, %v358_v33  ;;  %v359_v38 = vsub.f32 0.0, %v1282_v34 }
  0xfc   :  { %1094 = vpow2.f32 %v378_v35  ;;  %v380_v39 = vmul.f32 1.442695, %v361_v36 }
  0xfd   :  { %1096 = vpow2.f32 %v374_v37  ;;  %v376_v40 = vmul.f32 1.442695, %v359_v38  ;;  %v1028_v41 = vpop.f32.mrb[4].mxu0 }
  0xfe   :  { %1098 = vpow2.f32 %v380_v39  ;;  %v1287_v42 = vadd.f32 %v1028_v41, %v1268_v24  ;;  %v237_v43 = vpop.f32.mrb[5].mxu0 }
  0xff   :  { %1100 = vpow2.f32 %v376_v40  ;;  %v1290_v44 = vadd.f32 %v1268_v24, %v237_v43  ;;  %v1029_v45 = vpop.f32.mrb[6].mxu0 }
 0x100   :  { %v364_v46 = vsub.f32 0.0, %v1287_v42  ;;  %v1294_v47 = vadd.f32 %v1029_v45, %v1268_v24  ;;  %v240_v48 = vpop.f32.mrb[7].mxu0 }
 0x101   :  { %v362_v49 = vsub.f32 0.0, %v1290_v44  ;;  %v1298_v50 = vadd.f32 %v1268_v24, %v240_v48 }
 0x102   :  { %v386_v51 = vmul.f32 1.442695, %v364_v46  ;;  %v365_v52 = vsub.f32 0.0, %v1294_v47 }
 0x103   :  { %v382_v53 = vmul.f32 1.442695, %v362_v49  ;;  %v363_v54 = vsub.f32 0.0, %v1298_v50 }
 0x104   :  { %1102 = vpow2.f32 %v386_v51  ;;  %v388_v55 = vmul.f32 1.442695, %v365_v52 }
 0x105   :  { %1104 = vpow2.f32 %v382_v53  ;;  %v384_v56 = vmul.f32 1.442695, %v363_v54  ;;  %v1032_v57 = vpop.f32.mrb[8].mxu0 }
 0x106   :  { %v1095_v58 = vpop.eup %1094  ;;  %1106 = vpow2.f32 %v388_v55  ;;  %v1303_v59 = vadd.f32 %v1032_v57, %v1268_v24  ;;  %v253_v60 = vpop.f32.mrb[9].mxu0 }
 0x107   :  { %v1097_v61 = vpop.eup %1096  ;;  %v408_v62 = vadd.f32 1.0, %v1095_v58  ;;  %1108 = vpow2.f32 %v384_v56  ;;  %v1306_v63 = vadd.f32 %v1268_v24, %v253_v60  ;;  %v1033_v0 = vpop.f32.mrb[10].mxu0 }
 0x108   :  { %v1099_v1 = vpop.eup %1098  ;;  %v406_v2 = vadd.f32 1.0, %v1097_v61  ;;  %v368_v3 = vsub.f32 0.0, %v1303_v59  ;;  %v1310_v4 = vadd.f32 %v1033_v0, %v1268_v24  ;;  %v256_v5 = vpop.f32.mrb[11].mxu0 }
 0x109   :  { %v1101_v6 = vpop.eup %1100  ;;  %1110 = vrcp.f32 %v408_v62  ;;  %v409_v7 = vadd.f32 1.0, %v1099_v1  ;;  %v366_v8 = vsub.f32 0.0, %v1306_v63  ;;  %v1314_v9 = vadd.f32 %v1268_v24, %v256_v5 }
 0x10a   :  { %1112 = vrcp.f32 %v406_v2  ;;  %v407_v10 = vadd.f32 1.0, %v1101_v6  ;;  %v394_v11 = vmul.f32 1.442695, %v368_v3  ;;  %v369_v12 = vsub.f32 0.0, %v1310_v4 }
 0x10b   :  { %1114 = vrcp.f32 %v409_v7  ;;  %v390_v13 = vmul.f32 1.442695, %v366_v8  ;;  %v367_v14 = vsub.f32 0.0, %v1314_v9 }
 0x10c   :  { %1116 = vrcp.f32 %v407_v10  ;;  %v396_v15 = vmul.f32 1.442695, %v369_v12 }
 0x10d   :  { %1118 = vpow2.f32 %v394_v11  ;;  %v392_v16 = vmul.f32 1.442695, %v367_v14  ;;  %v1036_v17 = vpop.f32.mrb[12].mxu0 }
 0x10e   :  { %v1103_v18 = vpop.eup %1102  ;;  %1120 = vpow2.f32 %v390_v13  ;;  %v1319_v19 = vadd.f32 %v1036_v17, %v1268_v24  ;;  %v269_v20 = vpop.f32.mrb[13].mxu0 }
 0x10f   :  { %v1105_v21 = vpop.eup %1104  ;;  %v412_v22 = vadd.f32 1.0, %v1103_v18  ;;  %1122 = vpow2.f32 %v396_v15  ;;  %v1322_v23 = vadd.f32 %v1268_v24, %v269_v20  ;;  %v1037_v25 = vpop.f32.mrb[14].mxu0 }
 0x110   :  { %v1107_v27 = vpop.eup %1106  ;;  %v410_v29 = vadd.f32 1.0, %v1105_v21  ;;  %1124 = vpow2.f32 %v392_v16  ;;  %v372_v30 = vsub.f32 0.0, %v1319_v19  ;;  %v1326_v32 = vadd.f32 %v1037_v25, %v1268_v24  ;;  %v272_v33 = vpop.f32.mrb[15].mxu0 }
 0x111   :  { %v1109_v35 = vpop.eup %1108  ;;  %1126 = vrcp.f32 %v412_v22  ;;  %v413_v36 = vadd.f32 1.0, %v1107_v27  ;;  %v370_v37 = vsub.f32 0.0, %v1322_v23  ;;  %v1330_v38 = vadd.f32 %v1268_v24, %v272_v33 }
 0x112   :  { %1128 = vrcp.f32 %v410_v29  ;;  %v411_v39 = vadd.f32 1.0, %v1109_v35  ;;  %v402_v40 = vmul.f32 1.442695, %v372_v30  ;;  %v373_v41 = vsub.f32 0.0, %v1326_v32 }
 0x113   :  { %v1111_v43 = vpop.eup %1110  ;;  %1130 = vrcp.f32 %v413_v36  ;;  %v398_v45 = vmul.f32 1.442695, %v370_v37  ;;  %v371_v46 = vsub.f32 0.0, %v1330_v38 }
 0x114   :  { %v1113_v48 = vpop.eup %1112  ;;  %1132 = vrcp.f32 %v411_v39  ;;  %v404_v49 = vmul.f32 1.442695, %v373_v41  ;;  %v440_v24 = vmul.f32 %v1111_v43, %v1271_v26 }
 0x115   :  { %v1115_v51 = vpop.eup %1114  ;;  %1134 = vpow2.f32 %v402_v40  ;;  %v400_v52 = vmul.f32 1.442695, %v371_v46  ;;  %v438_v56 = vmul.f32 %v1113_v48, %v1274_v28 }
 0x116   :  { %v1117_v53 = vpop.eup %1116  ;;  %v441_v54 = vmul.f32 %v1115_v51, %v1278_v31  ;;  %1136 = vpow2.f32 %v398_v45 }
 0x117   :  { %v1119_v55 = vpop.eup %1118  ;;  %v439_v57 = vmul.f32 %v1117_v53, %v1282_v34  ;;  %1138 = vpow2.f32 %v404_v49 }
 0x118   :  { %v1121_v58 = vpop.eup %1120  ;;  %v416_v60 = vadd.f32 1.0, %v1119_v55  ;;  %1140 = vpow2.f32 %v400_v52  ;;  %v455_v61 = vpack.c.bf16 %v441_v54, %v440_v24 }
 0x119   :  { %v1123_v62 = vpop.eup %1122  ;;  %v414_v0 = vadd.f32 1.0, %v1121_v58  ;;  %v454_v1 = vpack.c.bf16 %v439_v57, %v438_v56 }
 0x11a   :  { %v1125_v2 = vpop.eup %1124  ;;  %1142 = vrcp.f32 %v416_v60  ;;  %v417_v3 = vadd.f32 1.0, %v1123_v62  ;;  %960 = vst [vmem:[%s1405_s5 + $0x8] sm:$0xff] %v455_v61  }
 0x11b   :  { %v1127_v26 = vpop.eup %1126  ;;  %1144 = vrcp.f32 %v414_v0  ;;  %v415_v28 = vadd.f32 1.0, %v1125_v2  ;;  %884 = vst [vmem:[%s1405_s5] sm:$0xff] %v454_v1   ;;  %1054 = vmatprep.mubr.bf16.mxu1 %v454_v1 }
 0x11c   :  { %v1129_v31 = vpop.eup %1128  ;;  %1146 = vrcp.f32 %v417_v3  ;;  %1055 = vmatmul.mubr.bf16.vlgmr.msra.gmra.mrb[0].mxu1 %v455_v61  ;;  %v444_v6 = vmul.f32 %v1127_v26, %v1287_v42 }
 0x11d   :  { %v1131_v34 = vpop.eup %1130  ;;  %1148 = vrcp.f32 %v415_v28  ;;  %v442_v10 = vmul.f32 %v1129_v31, %v1290_v44 }
 0x11e   :  { %v1133_v5 = vpop.eup %1132  ;;  %v445_v7 = vmul.f32 %v1131_v34, %v1294_v47 }
 0x11f   :  { %v1135_v8 = vpop.eup %1134  ;;  %v443_v11 = vmul.f32 %v1133_v5, %v1298_v50 }
 0x120   :  { %v1137_v12 = vpop.eup %1136  ;;  %v420_v13 = vadd.f32 1.0, %v1135_v8  ;;  %v457_v14 = vpack.c.bf16 %v445_v7, %v444_v6 }
 0x121   :  { %v1139_v15 = vpop.eup %1138  ;;  %v418_v16 = vadd.f32 1.0, %v1137_v12  ;;  %v456_v17 = vpack.c.bf16 %v443_v11, %v442_v10 }
 0x122   :  { %v1141_v18 = vpop.eup %1140  ;;  %1150 = vrcp.f32 %v420_v13  ;;  %v421_v20 = vadd.f32 1.0, %v1139_v15  ;;  %962 = vst [vmem:[%s1405_s5 + $0x18] sm:$0xff] %v457_v14  }
 0x123   :  { %1152 = vrcp.f32 %v418_v16  ;;  %v419_v42 = vadd.f32 1.0, %v1141_v18  ;;  %961 = vst [vmem:[%s1405_s5 + $0x10] sm:$0xff] %v456_v17   ;;  %1058 = vmatprep.mubr.bf16.mxu1 %v456_v17 }
 0x124   :  { %v1143_v44 = vpop.eup %1142  ;;  %1154 = vrcp.f32 %v421_v20  ;;  %1059 = vmatmul.mubr.bf16.gmra.mrb[4].mxu1 %v457_v14 }
 0x125   :  { %v1145_v47 = vpop.eup %1144  ;;  %1156 = vrcp.f32 %v419_v42  ;;  %v448_v22 = vmul.f32 %v1143_v44, %v1303_v59 }
 0x126   :  { %v1147_v50 = vpop.eup %1146  ;;  %v446_v27 = vmul.f32 %v1145_v47, %v1306_v63 }
 0x127   :  { %v1149_v21 = vpop.eup %1148  ;;  %v449_v25 = vmul.f32 %v1147_v50, %v1310_v4 }
 0x128   :  { %v447_v29 = vmul.f32 %v1149_v21, %v1314_v9 }
 0x129   :  { %v459_v30 = vpack.c.bf16 %v449_v25, %v448_v22 }
 0x12a   :  { %v458_v33 = vpack.c.bf16 %v447_v29, %v446_v27 }
 0x12b   :  { %964 = vst [vmem:[%s1405_s5 + $0x28] sm:$0xff] %v459_v30  }
 0x12c   :  { %v1151_v35 = vpop.eup %1150  ;;  %963 = vst [vmem:[%s1405_s5 + $0x20] sm:$0xff] %v458_v33   ;;  %1062 = vmatprep.mubr.bf16.mxu1 %v458_v33 }
 0x12d   :  { %v1153_v36 = vpop.eup %1152  ;;  %1063 = vmatmul.mubr.bf16.gmra.mrb[8].mxu1 %v459_v30  ;;  %v452_v63 = vmul.f32 %v1151_v35, %v1319_v19  ;;  %v823_v19 = vld [vmem:[%s1406_s4] ss:$0 sm:$0xff] }
 0x12e   :  { %v1155_v59 = vpop.eup %1154  ;;  %v450_v37 = vmul.f32 %v1153_v36, %v1322_v23 }
 0x12f   :  { %v1157_v4 = vpop.eup %1156  ;;  %v453_v9 = vmul.f32 %v1155_v59, %v1326_v32 }
 0x130   :  { %v451_v39 = vmul.f32 %v1157_v4, %v1330_v38 }
 0x131   :  { %v461_v40 = vpack.c.bf16 %v453_v9, %v452_v63 }
 0x132   :  { %v460_v41 = vpack.c.bf16 %v451_v39, %v450_v37 }
 0x133   :  { %966 = vst [vmem:[%s1405_s5 + $0x38] sm:$0xff] %v461_v40  }
 0x134   :  { %965 = vst [vmem:[%s1405_s5 + $0x30] sm:$0xff] %v460_v41   ;;  %1066 = vmatprep.mubr.bf16.mxu1 %v460_v41 }
 0x135   :  { %1067 = vmatmul.mubr.bf16.gmra.mrb[12].mxu1 %v461_v40 }
 0x1ef   :  { %v1056_v43 = vpop.f32.mrb[0].mxu1 }
 0x1f0   :  { %v639_v23 = vpop.f32.mrb[1].mxu1  ;;  %v648_v38 = vadd.f32 %v1056_v43, %v823_v19 }
 0x1f1   :  { %v1057_v32 = vpop.f32.mrb[2].mxu1  ;;  %v640_v48 = vadd.f32 %v823_v19, %v639_v23 }
 0x1f2   :  { %v651_v45 = vadd.f32 %v1057_v32, %v823_v19  ;;  %v642_v46 = vpop.f32.mrb[3].mxu1 }
 0x1f3   :  { %v643_v49 = vadd.f32 %v823_v19, %v642_v46 }
 0x1f4   :  { %v928_v51 = vpack.c.bf16 %v651_v45, %v648_v38 }
 0x1f5   :  { %v923_v52 = vpack.c.bf16 %v643_v49, %v640_v48 }
 0x1f6   :  { %967 = vst [vmem:[%s1407_s6 + $0x8] sm:$0xff] %v928_v51  }
 0x1f7   :  { %924 = vst [vmem:[%s1407_s6] sm:$0xff] %v923_v52   ;;  %v1060_v53 = vpop.f32.mrb[4].mxu1 }
 0x1f8   :  { %v655_v24 = vpop.f32.mrb[5].mxu1  ;;  %v664_v55 = vadd.f32 %v1060_v53, %v823_v19 }
 0x1f9   :  { %v1061_v54 = vpop.f32.mrb[6].mxu1  ;;  %v656_v58 = vadd.f32 %v823_v19, %v655_v24 }
 0x1fa   :  { %v667_v56 = vadd.f32 %v1061_v54, %v823_v19  ;;  %v658_v57 = vpop.f32.mrb[7].mxu1 }
 0x1fb   :  { %v659_v60 = vadd.f32 %v823_v19, %v658_v57 }
 0x1fc   :  { %v938_v61 = vpack.c.bf16 %v667_v56, %v664_v55 }
 0x1fd   :  { %v933_v62 = vpack.c.bf16 %v659_v60, %v656_v58 }
 0x1fe   :  { %969 = vst [vmem:[%s1407_s6 + $0x18] sm:$0xff] %v938_v61  }
 0x1ff   :  { %968 = vst [vmem:[%s1407_s6 + $0x10] sm:$0xff] %v933_v62  }
 0x200   :  { %v1064_v0 = vpop.f32.mrb[8].mxu1 }
 0x201   :  { %v671_v1 = vpop.f32.mrb[9].mxu1  ;;  %v680_v3 = vadd.f32 %v1064_v0, %v823_v19 }
 0x202   :  { %v1065_v2 = vpop.f32.mrb[10].mxu1  ;;  %v672_v31 = vadd.f32 %v823_v19, %v671_v1 }
 0x203   :  { %v683_v26 = vadd.f32 %v1065_v2, %v823_v19  ;;  %v674_v28 = vpop.f32.mrb[11].mxu1 }
 0x204   :  { %v675_v34 = vadd.f32 %v823_v19, %v674_v28 }
 0x205   :  { %v948_v5 = vpack.c.bf16 %v683_v26, %v680_v3 }
 0x206   :  { %v943_v6 = vpack.c.bf16 %v675_v34, %v672_v31 }
 0x207   :  { %971 = vst [vmem:[%s1407_s6 + $0x28] sm:$0xff] %v948_v5  }
 0x208   :  { %970 = vst [vmem:[%s1407_s6 + $0x20] sm:$0xff] %v943_v6   ;;  %v1068_v7 = vpop.f32.mrb[12].mxu1 }
 0x209   :  { %v687_v8 = vpop.f32.mrb[13].mxu1  ;;  %v696_v11 = vadd.f32 %v1068_v7, %v823_v19 }
 0x20a   :  { %v1069_v10 = vpop.f32.mrb[14].mxu1  ;;  %v688_v14 = vadd.f32 %v823_v19, %v687_v8 }
 0x20b   :  { %v699_v12 = vadd.f32 %v1069_v10, %v823_v19  ;;  %v690_v13 = vpop.f32.mrb[15].mxu1 }
 0x20c   :  { %v691_v15 = vadd.f32 %v823_v19, %v690_v13 }
 0x20d   :  { %v958_v16 = vpack.c.bf16 %v699_v12, %v696_v11 }
 0x20e   :  { %v953_v17 = vpack.c.bf16 %v691_v15, %v688_v14 }
 0x20f   :  { %973 = vst [vmem:[%s1407_s6 + $0x38] sm:$0xff] %v958_v16  }
 0x210   :  { %972 = vst [vmem:[%s1407_s6 + $0x30] sm:$0xff] %v953_v17  }

// kernel: flow_controlnet_first_frame_encoder.5
= control target key start
LH: loop header
LB: loop body
LE: loop exit
PB: predicated region body
PF: predicated region fallthrough
CT: control target
= control target key end

     0   :  { %s629_s0 = inlined_call_operand.vmem [shape: bf16[8,256], index: 0, kind: input, shape index: {}]   ;;  %s630_s1 = inlined_call_operand.vmem [shape: bf16[256,128], index: 1, kind: input, shape index: {}]   ;;  %s631_s2 = inlined_call_operand.vmem [shape: f32[1,128], index: 2, kind: input, shape index: {}]   ;;  %s632_s3 = inlined_call_operand.vmem [shape: bf16[128,128], index: 3, kind: input, shape index: {}]   ;;  %s633_s4 = inlined_call_operand.vmem [shape: f32[1,128], index: 4, kind: input, shape index: {}]   ;;  %s634_s5 = inlined_call_operand.hbm [shape: bf16[8,128], index: 5, kind: output, shape index: {0}]   ;;  %s635_s6 = inlined_call_operand.vmem [shape: bf16[8,128], index: 6, kind: output, shape index: {1}]  }
   0x1   :  { %v441_v0 = vld [vmem:[%s630_s1 + $0x40] sm:$0xff]   ;;  %v443_v2 = vld [vmem:[%s630_s1 + $0x48] sm:$0xff]   ;;  %v445_v4 = vld [vmem:[%s630_s1 + $0x50] sm:$0xff]  }
   0x2   :  { %v442_v1 = vld [vmem:[%s630_s1] sm:$0xff]   ;;  %387 = vmatprep.subr.bf16.mxu0 %v441_v0  ;;  %v444_v3 = vld [vmem:[%s630_s1 + $0x8] sm:$0xff]   ;;  %v446_v5 = vld [vmem:[%s630_s1 + $0x10] sm:$0xff]  }
   0x3   :  { %388 = vmatpush3.bf16.msra.mxu0 %v442_v1  ;;  %v447_v6 = vld [vmem:[%s630_s1 + $0x58] sm:$0xff]   ;;  %v449_v8 = vld [vmem:[%s630_s1 + $0x60] sm:$0xff]   ;;  %v451_v10 = vld [vmem:[%s630_s1 + $0x68] sm:$0xff]  }
   0x4   :  { %389 = vmatprep.subr.bf16.mxu0 %v443_v2  ;;  %v448_v7 = vld [vmem:[%s630_s1 + $0x18] sm:$0xff]   ;;  %v450_v9 = vld [vmem:[%s630_s1 + $0x20] sm:$0xff]   ;;  %v452_v12 = vld [vmem:[%s630_s1 + $0x28] sm:$0xff]  }
   0x5   :  { %v30_v11 = vld [vmem:[%s629_s0] sm:$0xff]  ;;  %v453_v14 = vld [vmem:[%s630_s1 + $0x70] sm:$0xff]  }
   0x6   :  { %v360_v13 = vcombine.high %v30_v11, %v30_v11 }
   0x7   :  { %390 = vmatpush3.bf16.msra.mxu0 %v444_v3 }
   0x8   :  { %391 = vmatprep.subr.bf16.mxu0 %v445_v4  ;;  %198 = vmatprep.mubr.bf16.mxu0 %v360_v13 }
   0xb   :  { %392 = vmatpush3.bf16.msra.mxu0 %v446_v5 }
   0xc   :  { %393 = vmatprep.subr.bf16.mxu0 %v447_v6 }
   0xf   :  { %394 = vmatpush3.bf16.msra.mxu0 %v448_v7 }
  0x10   :  { %395 = vmatprep.subr.bf16.mxu0 %v449_v8 }
  0x13   :  { %396 = vmatpush3.bf16.msra.mxu0 %v450_v9 }
  0x14   :  { %397 = vmatprep.subr.bf16.mxu0 %v451_v10 }
  0x15   :  { %12 = vsyncpa [#allocation4], 0  ;;  %v454_v15 = vld [vmem:[%s630_s1 + $0x30] sm:$0xff]   ;;  %v455_v16 = vld [vmem:[%s630_s1 + $0x78] sm:$0xff]   ;;  %v359_v18 = vcombine.low %v30_v11, %v30_v11  ;;  %v495_v20 = vmov 0.0   ;;  %vm496_vm0 = vmmov 0  }
  0x16   :  { %v456_v17 = vld [vmem:[%s630_s1 + $0x38] sm:$0xff]   ;;  %v459_v19 = vld [vmem:[%s632_s3] sm:$0xff]   ;;  %418 = vmatprep.subr.bf16.mxu1 %v495_v20  ;;  %v460_v21 = vld [vmem:[%s632_s3 + $0x8] sm:$0xff]   ;;  %434 = vmatprep.mubr.msk.bf16.mxu1 %vm496_vm0, %v495_v20 }
  0x17   :  { %398 = vmatpush3.bf16.msra.mxu0 %v452_v12  ;;  %419 = vmatpush3.bf16.msra.mxu1 %v459_v19  ;;  %v461_v22 = vld [vmem:[%s632_s3 + $0x10] sm:$0xff]   ;;  %v462_v23 = vld [vmem:[%s632_s3 + $0x18] sm:$0xff]   ;;  %v463_v24 = vld [vmem:[%s632_s3 + $0x20] sm:$0xff]  }
  0x18   :  { %399 = vmatprep.subr.bf16.mxu0 %v453_v14  ;;  %420 = vmatprep.subr.bf16.mxu1 %v495_v20  ;;  %v464_v25 = vld [vmem:[%s632_s3 + $0x28] sm:$0xff]   ;;  %v465_v26 = vld [vmem:[%s632_s3 + $0x30] sm:$0xff]   ;;  %v466_v27 = vld [vmem:[%s632_s3 + $0x38] sm:$0xff]   ;;  %s497_s3 = smov [#allocation3]  }
  0x19   :  { %v377_v30 = vld [vmem:[%s631_s2] ss:$0 sm:$0xff]  ;;  %s347_s23 = sshll.u32 %s497_s3, 4  ;;  %s348_s23 = int_to_ptr.vmem [resolvable:$true] %s347_s23 }
  0x1a   :  { %s471_s24 = scalar_lea.vmem %s348_s23, 64  ;;  %p476_p1 = scmp.lt.s32.totalorder %s348_s23, %s348_s23 }
  0x1b   :  { %400 = vmatpush3.bf16.msra.mxu0 %v454_v15  ;;  %421 = vmatpush3.bf16.msra.mxu1 %v460_v21  ;;  %p472_p0 = scmp.ne.s32.totalorder %s348_s23, %s471_s24  ;;  %p477_p2 = scmp.lt.s32.totalorder %s471_s24, %s471_s24 }
  0x1c   :  { %401 = vmatprep.subr.bf16.mxu0 %v455_v16  ;;  %422 = vmatprep.subr.bf16.mxu1 %v495_v20 }
  0x1d   :  { %p478_p3 = por %p477_p2, %p476_p1 }
  0x1f   :  { %402 = vmatpush3.bf16.msra.mxu0 %v456_v17  ;;  %423 = vmatpush3.bf16.msra.mxu1 %v461_v22  ;;  %p479_p4 = pnand %p478_p3, %p472_p0 }
  0x20   :  { %424 = vmatprep.subr.bf16.mxu1 %v495_v20 }
  0x22   :  { %199 = vmatmul.mubr.bf16.vlgmr.msra.gmra.mrb[0].mxu0 %v359_v18 }
  0x23   :  { %425 = vmatpush3.bf16.msra.mxu1 %v462_v23 }
  0x24   :  { %426 = vmatprep.subr.bf16.mxu1 %v495_v20 }
  0x27   :  { %427 = vmatpush3.bf16.msra.mxu1 %v463_v24 }
  0x28   :  { %428 = vmatprep.subr.bf16.mxu1 %v495_v20 }
  0x2b   :  { %429 = vmatpush3.bf16.msra.mxu1 %v464_v25 }
  0x2c   :  { %430 = vmatprep.subr.bf16.mxu1 %v495_v20 }
  0x2f   :  { %431 = vmatpush3.bf16.msra.mxu1 %v465_v26 }
  0x30   :  { %432 = vmatprep.subr.bf16.mxu1 %v495_v20 }
  0x33   :  { %433 = vmatpush3.bf16.msra.mxu1 %v466_v27 }
  0xf5   :  { %v403_v28 = vpop.f32.mrb[0].mxu0 }
  0xf6   :  { %v404_v29 = vpop.f32.mrb[1].mxu0 }
  0xf7   :  { %v405_v31 = vadd.f32 %v404_v29, %v403_v28  ;;  %v406_v32 = vpop.f32.mrb[2].mxu0 }
  0xf8   :  { %v407_v33 = vpop.f32.mrb[3].mxu0 }
  0xf9   :  { %v219_v34 = vadd.f32 %v405_v31, %v377_v30 }
  0xfb   :  { %v220_v35 = vsub.f32 0.0, %v219_v34 }
  0xfd   :  { %v221_v36 = vmul.f32 1.442695, %v220_v35 }
  0xff   :  { %467 = vpow2.f32 %v221_v36 }
 0x109   :  { %v468_v37 = vpop.eup %467 }
 0x10a   :  { %v223_v38 = vadd.f32 1.0, %v468_v37 }
 0x10c   :  { %469 = vrcp.f32 %v223_v38 }
 0x116   :  { %v470_v39 = vpop.eup %469 }
 0x117   :  { %v225_v40 = vmul.f32 %v470_v39, %v219_v34 }
 0x119   :  { %v226_v41 = vpack.c.bf16 %v225_v40, %v225_v40 }
 0x11b   :  { %435 = vmatmul.mubr.bf16.vlgmr.msra.gmra.mrb[0].mxu1 %v226_v41  ;;  %227 = vst [vmem:[#allocation3] sm:$0xf] %v226_v41 }
 0x11c   :  { %482 = shalt.err (!%p479_p4)
}
 0x11d   :  { %s483_s26 = scalar_lea.hbm %s634_s5, 64 }
 0x11e   :  { %p484_p5 = scmp.ne.s32.totalorder %s634_s5, %s483_s26  ;;  %p487_p6 = scmp.lt.u32.totalorder %s483_s26, %s634_s5 }
 0x120   :  { %p489_p7 = pnand %p487_p6, %p484_p5 }
 0x122   :  { %492 = shalt.err (!%p489_p7)
}
 0x123   :  { %350 = dma.vmem_to_hbm [thread:$0]  %s348_s23, 64, %s634_s5, [#allocation4]   ;;  %v378_v42 = vld [vmem:[%s633_s4] ss:$0 sm:$0xff] }
 0x1ee   :  { %v333_v43 = vpop.f32.mrb[0].mxu1 }
 0x1ef   :  { %v334_v44 = vadd.f32 %v378_v42, %v333_v43  ;;  %v436_v45 = vpop.f32.mrb[1].mxu1 }
 0x1f0   :  { %v336_v46 = vpop.f32.mrb[2].mxu1 }
 0x1f1   :  { %v339_v47 = vpack.c.bf16 %v334_v44, %v334_v44  ;;  %v437_v48 = vpop.f32.mrb[3].mxu1 }
 0x1f3   :  { %340 = vst [vmem:[%s635_s6] sm:$0xf] %v339_v47 }
 0x1f4   :  { %493 = dma.done.wait [#allocation4], 64  }
 0x1f5   :  { %494 = vsyncadd [#allocation4], 4294967232 }
 0x1f6   :  { %358 = vsyncpa [#allocation4], 1 }

</bundles_post_ra>
